<compile_context>
chip_gen: v7x
topology: tpu7x:2x2x1
jax: 0.10.0
libtpu: 0.0.40
codegen_flags: <defaults>
</compile_context>

<pallas_src>
import functools

import jax
import jax.numpy as jnp
from jax import lax
from jax.experimental import pallas as pl
from jax.experimental.pallas import tpu as pltpu

_LANES = 128


def _cdiv(a, b):
    return -(-a // b)


def _default_num_parallel():
    """2 on chips with two TensorCores per chip (v4/v5p/v7x), else 1."""
    try:
        kind = jax.devices()[0].device_kind.lower()
    except Exception:
        return 1
    if "lite" in kind or "v5e" in kind or "v6e" in kind or "v6 lite" in kind:
        return 1
    if "v4" in kind or "v5p" in kind or "v7" in kind:
        return 2
    return 1


def _ccc_stats_kernel(pred_ref, true_ref, out_ref, *, ignore, total_tiles,
                      steps, tb, tpc, num_chunks, sublanes, unroll):
    """Accumulate masked sufficient statistics for one (tb, sublanes, 128) block."""
    p = pl.program_id(0)           # "parallel" axis (TensorCore shard)
    s = pl.program_id(1)           # "arbitrary" reduction axis

    @pl.when(s == 0)
    def _init():
        out_ref[...] = jnp.zeros_like(out_ref)

    # Logical (un-clamped) first tile of this block.  Used to mask grid
    # overshoot and the stale tail of the partial boundary block.
    block_tile0 = (p * steps + s) * tb

    # Hoisted per-chunk tile-index iota (constant across chunks).
    idx0 = lax.broadcasted_iota(jnp.int32, (tpc, sublanes, _LANES), 0)
    zero = jnp.zeros((sublanes, _LANES), jnp.float32)

    def body(c, carry):
        cnt_a, sx_a, sy_a, sxx_a, syy_a, sxy_a = carry
        start = pl.multiple_of(c * tpc, tpc)
        pred = pred_ref[pl.ds(start, tpc)].astype(jnp.float32)
        true = true_ref[pl.ds(start, tpc)].astype(jnp.float32)

        # Logical in-bounds mask: global tile index < total_tiles.
        rem = total_tiles - block_tile0 - start
        in_bounds = idx0 < rem
        # Keep jnp.where (not a multiply) so NaN/Inf garbage in out-of-bounds
        # rows of a partial boundary block cannot propagate (NaN * 0 == NaN).
        valid = jnp.logical_and(true != jnp.float32(ignore), in_bounds)
        cnt = valid.astype(jnp.float32)
        x = jnp.where(valid, pred, 0.0)        # masked y_pred
        y = jnp.where(valid, true, 0.0)        # masked y_true

        # Reduce only over the leading (tile-count) axis: pure VPU adds, no XLU.
        cnt_a = cnt_a + jnp.sum(cnt, axis=0)
        sx_a = sx_a + jnp.sum(x, axis=0)
        sy_a = sy_a + jnp.sum(y, axis=0)
        sxx_a = sxx_a + jnp.sum(x * x, axis=0)
        syy_a = syy_a + jnp.sum(y * y, axis=0)
        sxy_a = sxy_a + jnp.sum(x * y, axis=0)
        return (cnt_a, sx_a, sy_a, sxx_a, syy_a, sxy_a)

    acc = lax.fori_loop(0, num_chunks, body, (zero,) * 6, unroll=unroll)

    out_ref[0] += acc[0]   # n_valid
    out_ref[1] += acc[1]   # Σ x
    out_ref[2] += acc[2]   # Σ y
    out_ref[3] += acc[3]   # Σ x²
    out_ref[4] += acc[4]   # Σ y²
    out_ref[5] += acc[5]   # Σ xy


def ccc_loss(y_pred, y_true, ignore=-5.0, *, tiles_per_block=512,
             tiles_per_chunk=8, num_parallel=None, interpret=False):
    """Pallas TPU implementation of CCCLoss.forward.  Inputs: 1-D (N,) arrays."""
    assert y_pred.ndim == 1 and y_pred.shape == y_true.shape
    n = int(y_pred.shape[0])

    # Native-dtype streaming: 16-bit inputs pack two rows per sublane.
    itemsize = min(jnp.dtype(y_pred.dtype).itemsize,
                   jnp.dtype(y_true.dtype).itemsize)
    pack = max(1, 4 // max(1, itemsize))
    sublanes = 8 * pack
    tile = sublanes * _LANES

    total_tiles = max(1, _cdiv(n, tile))

    if num_parallel is None:
        num_parallel = _default_num_parallel()
    num_parallel = max(1, int(num_parallel))

    tpc = max(1, int(tiles_per_chunk))
    if total_tiles < num_parallel * tpc:       # too small to split across cores
        num_parallel = 1

    tb = max(1, min(int(tiles_per_block), _cdiv(total_tiles, num_parallel)))
    if tb >= tpc:
        tb = (tb // tpc) * tpc                 # block = whole number of chunks
    else:
        tpc = tb                               # single chunk per block
    num_chunks = tb // tpc
    steps = _cdiv(total_tiles, tb * num_parallel)
    max_blk = _cdiv(total_tiles, tb) - 1       # last block touching valid data
    unroll = num_chunks if num_chunks <= 8 else 8

    # Pad only up to one tile (the mask drops it); no grid-sized padding.
    pad = total_tiles * tile - n
    pred1d, true1d = y_pred, y_true
    if pad:
        pred1d = jnp.pad(pred1d, (0, pad))
        true1d = jnp.pad(true1d, (0, pad), constant_values=ignore)
    pred3d = pred1d.reshape(total_tiles, sublanes, _LANES)
    true3d = true1d.reshape(total_tiles, sublanes, _LANES)

    kernel = functools.partial(
        _ccc_stats_kernel, ignore=float(ignore), total_tiles=total_tiles,
        steps=steps, tb=tb, tpc=tpc, num_chunks=num_chunks,
        sublanes=sublanes, unroll=unroll)

    def in_map(p, s):
        # Clamp so no DMA starts fully out of bounds; the kernel zeroes the
        # contribution of clamped (duplicate) blocks via the logical tile index.
        return (jnp.minimum(p * steps + s, max_blk), 0, 0)

    buf_bytes = 2 * tb * sublanes * _LANES * (
        jnp.dtype(y_pred.dtype).itemsize + jnp.dtype(y_true.dtype).itemsize)
    vmem_limit = int(min(96 * 2**20, max(32 * 2**20, 2 * buf_bytes + (8 << 20))))

    partials = pl.pallas_call(
        kernel,
        out_shape=jax.ShapeDtypeStruct(
            (num_parallel * 6, sublanes, _LANES), jnp.float32),
        grid=(num_parallel, steps),
        in_specs=[pl.BlockSpec((tb, sublanes, _LANES), in_map),
                  pl.BlockSpec((tb, sublanes, _LANES), in_map)],
        out_specs=pl.BlockSpec((6, sublanes, _LANES), lambda p, s: (p, 0, 0)),
        compiler_params=pltpu.CompilerParams(
            dimension_semantics=("parallel", "arbitrary"),
            vmem_limit_bytes=vmem_limit,
            allow_input_fusion=[True, True]),
        interpret=interpret,
    )(pred3d, true3d)

    # Tiny epilogue: combine per-core / per-bin partials and evaluate CCC.
    stats = partials.reshape(num_parallel, 6, -1).sum(axis=(0, 2))   # (6,)
    cnt, sx, sy, sxx, syy, sxy = (stats[i] for i in range(6))

    safe_n = jnp.maximum(cnt, 1.0)
    x_m = sx / safe_n                       # mean(y_pred[valid])
    y_m = sy / safe_n                       # mean(y_true[valid])
    dof = jnp.maximum(cnt - 1.0, 1.0)       # torch.std is unbiased (n-1)
    var_pred = (sxx - safe_n * x_m * x_m) / dof
    var_true = (syy - safe_n * y_m * y_m) / dof
    s_xy = sxy - safe_n * x_m * y_m
    denom = var_true + var_pred + (x_m - y_m) ** 2 + 1e-8
    # NOTE: the reference divides by the ORIGINAL (unfiltered) batch size.
    ccc = 2.0 * s_xy / (denom * jnp.float32(max(n, 1)))
    loss = 1.0 - ccc
    return jnp.where(cnt <= 1.0, jnp.float32(0.0), loss)


def _ccc_loss_ref(y_pred, y_true, ignore=-5.0):
    """Two-pass pure-JAX reference mirroring the PyTorch semantics."""
    n_total = y_pred.shape[0]
    y_pred = y_pred.astype(jnp.float32)
    y_true = y_true.astype(jnp.float32)
    mask = y_true != ignore
    m = mask.astype(jnp.float32)
    n = jnp.sum(m)
    safe_n = jnp.maximum(n, 1.0)
    x_m = jnp.sum(y_pred * m) / safe_n
    y_m = jnp.sum(y_true * m) / safe_n
    v_pred = jnp.where(mask, y_pred - x_m, 0.0)
    v_true = jnp.where(mask, y_true - y_m, 0.0)
    dof = jnp.maximum(n - 1.0, 1.0)
    var_true = jnp.sum(v_true ** 2) / dof
    var_pred = jnp.sum(v_pred ** 2) / dof
    s_xy = jnp.sum(v_pred * v_true)
    denom = var_true + var_pred + (x_m - y_m) ** 2 + 1e-8
    ccc = 2.0 * s_xy / (denom * n_total)
    return jnp.where(n <= 1.0, 0.0, 1.0 - ccc)


if __name__ == "__main__":
    key = jax.random.PRNGKey(0)
    ks = jax.random.split(key, 9)

    # --- small case: single tile, single grid step --------------------------
    N1 = 256
    y_pred1 = jax.random.normal(ks[0], (N1,), dtype=jnp.float32)
    y_true1 = 0.7 * y_pred1 + 0.3 * jax.random.normal(ks[1], (N1,), dtype=jnp.float32)
    y_true1 = jnp.where(jax.random.bernoulli(ks[2], p=0.1, shape=(N1,)),
                        jnp.float32(-5.0), y_true1)
    loss1 = ccc_loss(y_pred1, y_true1, ignore=-5.0)
    jax.block_until_ready(loss1)
    ref1 = _ccc_loss_ref(y_pred1, y_true1, ignore=-5.0)
    assert jnp.allclose(loss1, ref1, rtol=1e-4, atol=1e-5), (loss1, ref1)

    # --- tiled case: (parallel, arbitrary) grid, ragged tail, clamped block --
    N2 = 10_000
    y_pred2 = jax.random.normal(ks[3], (N2,), dtype=jnp.float32)
    y_true2 = 0.5 * y_pred2 + 0.5 * jax.random.normal(ks[4], (N2,), dtype=jnp.float32)
    y_true2 = jnp.where(jax.random.bernoulli(ks[5], p=0.15, shape=(N2,)),
                        jnp.float32(-5.0), y_true2)
    loss2 = ccc_loss(y_pred2, y_true2, ignore=-5.0,
                     tiles_per_block=4, tiles_per_chunk=2, num_parallel=2)
    jax.block_until_ready(loss2)
    ref2 = _ccc_loss_ref(y_pred2, y_true2, ignore=-5.0)
    assert jnp.allclose(loss2, ref2, rtol=1e-4, atol=1e-5), (loss2, ref2)

    # --- bf16 case: native 16-bit streaming in packed (16, 128) tiles -------
    N3 = 5_000
    p3 = jax.random.normal(ks[6], (N3,), dtype=jnp.float32)
    t3 = 0.6 * p3 + 0.4 * jax.random.normal(ks[7], (N3,), dtype=jnp.float32)
    t3 = jnp.where(jax.random.bernoulli(ks[8], p=0.1, shape=(N3,)),
                   jnp.float32(-5.0), t3)
    y_pred3 = p3.astype(jnp.bfloat16)
    y_true3 = t3.astype(jnp.bfloat16)
    loss3 = ccc_loss(y_pred3, y_true3, ignore=-5.0,
                     tiles_per_block=2, tiles_per_chunk=1, num_parallel=2)
    jax.block_until_ready(loss3)
    ref3 = _ccc_loss_ref(y_pred3, y_true3, ignore=-5.0)
    assert jnp.allclose(loss3, ref3, rtol=5e-3, atol=1e-3), (loss3, ref3)

    print("KERNEL_OK")
</pallas_src>

<mosaic_0001>
module attributes {stable_mosaic.version = 11 : i64} {
  func.func @_ccc_stats_kernel(%arg0: i32, %arg1: i32, %arg2: memref<1x8x128xf32, #tpu.memory_space<vmem>>, %arg3: memref<1x8x128xf32, #tpu.memory_space<vmem>>, %arg4: memref<6x8x128xf32, #tpu.memory_space<vmem>>) attributes {dimension_semantics = [#tpu.dimension_semantics<parallel>, #tpu.dimension_semantics<arbitrary>], iteration_bounds = array<i64: 1, 1>, scalar_prefetch = 0 : i64, scratch_operands = 0 : i64, tpu.core_type = #tpu.core_type<tc>, window_params = [{transform_indices = @transform_0, window_bounds = array<i64: 1, 8, 128>}, {transform_indices = @transform_1, window_bounds = array<i64: 1, 8, 128>}, {transform_indices = @transform_2, window_bounds = array<i64: 6, 8, 128>}]} {
    %c0_i32 = arith.constant 0 : i32
    %0 = arith.cmpi eq, %arg1, %c0_i32 : i32
    %1 = arith.extui %0 : i1 to i32
    %c0_i32_0 = arith.constant 0 : i32
    %2 = arith.cmpi ne, %1, %c0_i32_0 : i32
    scf.if %2 {
      %cst_49 = arith.constant 0.000000e+00 : f32
      %78 = vector.broadcast %cst_49 : f32 to vector<6x8x128xf32>
      %c0_50 = arith.constant 0 : index
      %c0_51 = arith.constant 0 : index
      %c0_52 = arith.constant 0 : index
      %79 = vector.load %arg4[%c0_50, %c0_51, %c0_52] : memref<6x8x128xf32, #tpu.memory_space<vmem>>, vector<6x8x128xf32>
      tpu.vector_store %arg4[%c0_50, %c0_51, %c0_52], %78 {strides = array<i32>} : memref<6x8x128xf32, #tpu.memory_space<vmem>>, vector<6x8x128xf32>,
    } else {
    }
    %c1_i32 = arith.constant 1 : i32
    %3 = arith.muli %arg0, %c1_i32 : i32
    %4 = arith.addi %3, %arg1 : i32
    %c1_i32_1 = arith.constant 1 : i32
    %5 = arith.muli %4, %c1_i32_1 : i32
    %6 = tpu.iota {dimensions = array<i32: 0>} : vector<1x8x128xi32>
    %cst = arith.constant 0.000000e+00 : f32
    %7 = vector.broadcast %cst : f32 to vector<8x128xf32>
    %c0_i32_2 = arith.constant 0 : i32
    %c1_i32_3 = arith.constant 1 : i32
    %8 = arith.muli %c0_i32_2, %c1_i32_3 : i32
    %9 = tpu.assume_multiple %8, 1 : i32
    %10 = arith.index_cast %9 : i32 to index
    %c0 = arith.constant 0 : index
    %c0_4 = arith.constant 0 : index
    %11 = vector.load %arg2[%10, %c0, %c0_4] : memref<1x8x128xf32, #tpu.memory_space<vmem>>, vector<1x8x128xf32>
    %12 = arith.index_cast %9 : i32 to index
    %c0_5 = arith.constant 0 : index
    %c0_6 = arith.constant 0 : index
    %13 = vector.load %arg3[%12, %c0_5, %c0_6] : memref<1x8x128xf32, #tpu.memory_space<vmem>>, vector<1x8x128xf32>
    %c1_i32_7 = arith.constant 1 : i32
    %14 = arith.subi %c1_i32_7, %5 : i32
    %15 = arith.subi %14, %9 : i32
    %16 = vector.broadcast %15 : i32 to vector<1x8x128xi32>
    %17 = arith.cmpi slt, %6, %16 : vector<1x8x128xi32>
    %cst_8 = arith.constant -5.000000e+00 : f32
    %18 = vector.broadcast %cst_8 : f32 to vector<1x8x128xf32>
    %19 = arith.cmpf one, %13, %18 : vector<1x8x128xf32>
    %20 = arith.andi %19, %17 : vector<1x8x128xi1>
    %21 = arith.extui %20 : vector<1x8x128xi1> to vector<1x8x128xi32>
    %22 = arith.sitofp %21 : vector<1x8x128xi32> to vector<1x8x128xf32>
    %cst_9 = arith.constant 0.000000e+00 : f32
    %23 = vector.broadcast %cst_9 : f32 to vector<1x8x128xf32>
    %24 = arith.select %20, %11, %23 : vector<1x8x128xi1>, vector<1x8x128xf32>
    %cst_10 = arith.constant 0.000000e+00 : f32
    %25 = vector.broadcast %cst_10 : f32 to vector<1x8x128xf32>
    %26 = arith.select %20, %13, %25 : vector<1x8x128xi1>, vector<1x8x128xf32>
    %cst_11 = arith.constant dense<0.000000e+00> : vector<8x128xf32>
    %27 = vector.multi_reduction <add>, %22, %cst_11 [0] : vector<1x8x128xf32> to vector<8x128xf32>
    %28 = arith.addf %7, %27 : vector<8x128xf32>
    %cst_12 = arith.constant dense<0.000000e+00> : vector<8x128xf32>
    %29 = vector.multi_reduction <add>, %24, %cst_12 [0] : vector<1x8x128xf32> to vector<8x128xf32>
    %30 = arith.addf %7, %29 : vector<8x128xf32>
    %cst_13 = arith.constant dense<0.000000e+00> : vector<8x128xf32>
    %31 = vector.multi_reduction <add>, %26, %cst_13 [0] : vector<1x8x128xf32> to vector<8x128xf32>
    %32 = arith.addf %7, %31 : vector<8x128xf32>
    %33 = arith.mulf %24, %24 : vector<1x8x128xf32>
    %cst_14 = arith.constant dense<0.000000e+00> : vector<8x128xf32>
    %34 = vector.multi_reduction <add>, %33, %cst_14 [0] : vector<1x8x128xf32> to vector<8x128xf32>
    %35 = arith.addf %7, %34 : vector<8x128xf32>
    %36 = arith.mulf %26, %26 : vector<1x8x128xf32>
    %cst_15 = arith.constant dense<0.000000e+00> : vector<8x128xf32>
    %37 = vector.multi_reduction <add>, %36, %cst_15 [0] : vector<1x8x128xf32> to vector<8x128xf32>
    %38 = arith.addf %7, %37 : vector<8x128xf32>
    %39 = arith.mulf %24, %26 : vector<1x8x128xf32>
    %cst_16 = arith.constant dense<0.000000e+00> : vector<8x128xf32>
    %40 = vector.multi_reduction <add>, %39, %cst_16 [0] : vector<1x8x128xf32> to vector<8x128xf32>
    %41 = arith.addf %7, %40 : vector<8x128xf32>
    %c1_i32_17 = arith.constant 1 : i32
    %c0_18 = arith.constant 0 : index
    %c0_19 = arith.constant 0 : index
    %c0_20 = arith.constant 0 : index
    %42 = vector.load %arg4[%c0_18, %c0_19, %c0_20] : memref<6x8x128xf32, #tpu.memory_space<vmem>>, vector<1x8x128xf32>
    %43 = vector.shape_cast %42 : vector<1x8x128xf32> to vector<8x128xf32>
    %44 = arith.addf %43, %28 : vector<8x128xf32>
    %c0_21 = arith.constant 0 : index
    %c0_22 = arith.constant 0 : index
    %c0_23 = arith.constant 0 : index
    %45 = vector.load %arg4[%c0_21, %c0_22, %c0_23] : memref<6x8x128xf32, #tpu.memory_space<vmem>>, vector<1x8x128xf32>
    %46 = vector.shape_cast %45 : vector<1x8x128xf32> to vector<8x128xf32>
    %47 = vector.shape_cast %44 : vector<8x128xf32> to vector<1x8x128xf32>
    tpu.vector_store %arg4[%c0_21, %c0_22, %c0_23], %47 {strides = array<i32>} : memref<6x8x128xf32, #tpu.memory_space<vmem>>, vector<1x8x128xf32>,
    %c1 = arith.constant 1 : index
    %c0_24 = arith.constant 0 : index
    %c0_25 = arith.constant 0 : index
    %48 = vector.load %arg4[%c1, %c0_24, %c0_25] : memref<6x8x128xf32, #tpu.memory_space<vmem>>, vector<1x8x128xf32>
    %49 = vector.shape_cast %48 : vector<1x8x128xf32> to vector<8x128xf32>
    %50 = arith.addf %49, %30 : vector<8x128xf32>
    %c1_26 = arith.constant 1 : index
    %c0_27 = arith.constant 0 : index
    %c0_28 = arith.constant 0 : index
    %51 = vector.load %arg4[%c1_26, %c0_27, %c0_28] : memref<6x8x128xf32, #tpu.memory_space<vmem>>, vector<1x8x128xf32>
    %52 = vector.shape_cast %51 : vector<1x8x128xf32> to vector<8x128xf32>
    %53 = vector.shape_cast %50 : vector<8x128xf32> to vector<1x8x128xf32>
    tpu.vector_store %arg4[%c1_26, %c0_27, %c0_28], %53 {strides = array<i32>} : memref<6x8x128xf32, #tpu.memory_space<vmem>>, vector<1x8x128xf32>,
    %c2 = arith.constant 2 : index
    %c0_29 = arith.constant 0 : index
    %c0_30 = arith.constant 0 : index
    %54 = vector.load %arg4[%c2, %c0_29, %c0_30] : memref<6x8x128xf32, #tpu.memory_space<vmem>>, vector<1x8x128xf32>
    %55 = vector.shape_cast %54 : vector<1x8x128xf32> to vector<8x128xf32>
    %56 = arith.addf %55, %32 : vector<8x128xf32>
    %c2_31 = arith.constant 2 : index
    %c0_32 = arith.constant 0 : index
    %c0_33 = arith.constant 0 : index
    %57 = vector.load %arg4[%c2_31, %c0_32, %c0_33] : memref<6x8x128xf32, #tpu.memory_space<vmem>>, vector<1x8x128xf32>
    %58 = vector.shape_cast %57 : vector<1x8x128xf32> to vector<8x128xf32>
    %59 = vector.shape_cast %56 : vector<8x128xf32> to vector<1x8x128xf32>
    tpu.vector_store %arg4[%c2_31, %c0_32, %c0_33], %59 {strides = array<i32>} : memref<6x8x128xf32, #tpu.memory_space<vmem>>, vector<1x8x128xf32>,
    %c3 = arith.constant 3 : index
    %c0_34 = arith.constant 0 : index
    %c0_35 = arith.constant 0 : index
    %60 = vector.load %arg4[%c3, %c0_34, %c0_35] : memref<6x8x128xf32, #tpu.memory_space<vmem>>, vector<1x8x128xf32>
    %61 = vector.shape_cast %60 : vector<1x8x128xf32> to vector<8x128xf32>
    %62 = arith.addf %61, %35 : vector<8x128xf32>
    %c3_36 = arith.constant 3 : index
    %c0_37 = arith.constant 0 : index
    %c0_38 = arith.constant 0 : index
    %63 = vector.load %arg4[%c3_36, %c0_37, %c0_38] : memref<6x8x128xf32, #tpu.memory_space<vmem>>, vector<1x8x128xf32>
    %64 = vector.shape_cast %63 : vector<1x8x128xf32> to vector<8x128xf32>
    %65 = vector.shape_cast %62 : vector<8x128xf32> to vector<1x8x128xf32>
    tpu.vector_store %arg4[%c3_36, %c0_37, %c0_38], %65 {strides = array<i32>} : memref<6x8x128xf32, #tpu.memory_space<vmem>>, vector<1x8x128xf32>,
    %c4 = arith.constant 4 : index
    %c0_39 = arith.constant 0 : index
    %c0_40 = arith.constant 0 : index
    %66 = vector.load %arg4[%c4, %c0_39, %c0_40] : memref<6x8x128xf32, #tpu.memory_space<vmem>>, vector<1x8x128xf32>
    %67 = vector.shape_cast %66 : vector<1x8x128xf32> to vector<8x128xf32>
    %68 = arith.addf %67, %38 : vector<8x128xf32>
    %c4_41 = arith.constant 4 : index
    %c0_42 = arith.constant 0 : index
    %c0_43 = arith.constant 0 : index
    %69 = vector.load %arg4[%c4_41, %c0_42, %c0_43] : memref<6x8x128xf32, #tpu.memory_space<vmem>>, vector<1x8x128xf32>
    %70 = vector.shape_cast %69 : vector<1x8x128xf32> to vector<8x128xf32>
    %71 = vector.shape_cast %68 : vector<8x128xf32> to vector<1x8x128xf32>
    tpu.vector_store %arg4[%c4_41, %c0_42, %c0_43], %71 {strides = array<i32>} : memref<6x8x128xf32, #tpu.memory_space<vmem>>, vector<1x8x128xf32>,
    %c5 = arith.constant 5 : index
    %c0_44 = arith.constant 0 : index
    %c0_45 = arith.constant 0 : index
    %72 = vector.load %arg4[%c5, %c0_44, %c0_45] : memref<6x8x128xf32, #tpu.memory_space<vmem>>, vector<1x8x128xf32>
    %73 = vector.shape_cast %72 : vector<1x8x128xf32> to vector<8x128xf32>
    %74 = arith.addf %73, %41 : vector<8x128xf32>
    %c5_46 = arith.constant 5 : index
    %c0_47 = arith.constant 0 : index
    %c0_48 = arith.constant 0 : index
    %75 = vector.load %arg4[%c5_46, %c0_47, %c0_48] : memref<6x8x128xf32, #tpu.memory_space<vmem>>, vector<1x8x128xf32>
    %76 = vector.shape_cast %75 : vector<1x8x128xf32> to vector<8x128xf32>
    %77 = vector.shape_cast %74 : vector<8x128xf32> to vector<1x8x128xf32>
    tpu.vector_store %arg4[%c5_46, %c0_47, %c0_48], %77 {strides = array<i32>} : memref<6x8x128xf32, #tpu.memory_space<vmem>>, vector<1x8x128xf32>,
    return
  }
  func.func @transform_0(%arg0: i32, %arg1: i32) -> (i32, i32, i32) {
    %c1_i32 = arith.constant 1 : i32
    %0 = arith.muli %arg0, %c1_i32 : i32
    %1 = arith.addi %0, %arg1 : i32
    %c0_i32 = arith.constant 0 : i32
    %2 = arith.minsi %1, %c0_i32 : i32
    %c0_i32_0 = arith.constant 0 : i32
    %c0_i32_1 = arith.constant 0 : i32
    %c0_i32_2 = arith.constant 0 : i32
    return %2, %c0_i32_0, %c0_i32_1 : i32, i32, i32
  }
  func.func @transform_1(%arg0: i32, %arg1: i32) -> (i32, i32, i32) {
    %c1_i32 = arith.constant 1 : i32
    %0 = arith.muli %arg0, %c1_i32 : i32
    %1 = arith.addi %0, %arg1 : i32
    %c0_i32 = arith.constant 0 : i32
    %2 = arith.minsi %1, %c0_i32 : i32
    %c0_i32_0 = arith.constant 0 : i32
    %c0_i32_1 = arith.constant 0 : i32
    %c0_i32_2 = arith.constant 0 : i32
    return %2, %c0_i32_0, %c0_i32_1 : i32, i32, i32
  }
  func.func @transform_2(%arg0: i32, %arg1: i32) -> (i32, i32, i32) {
    %c0_i32 = arith.constant 0 : i32
    %c0_i32_0 = arith.constant 0 : i32
    %c0_i32_1 = arith.constant 0 : i32
    return %arg0, %c0_i32, %c0_i32_0 : i32, i32, i32
  }
}

</mosaic_0001>

<bundles_post_ra>
// kernel: tpu_custom_call.1
= control target key start
LH: loop header
LB: loop body
LE: loop exit
PB: predicated region body
PF: predicated region fallthrough
CT: control target
= control target key end

     0   :  { %7 = vsyncpa [#allocation3], 0  ;;  %s274_s0 = inlined_call_operand.hbm [shape: f32[1,8,128], index: 0, kind: input, shape index: {}]   ;;  %s275_s1 = inlined_call_operand.hbm [shape: f32[1,8,128], index: 1, kind: input, shape index: {}]   ;;  %s276_s2 = inlined_call_operand.hbm [shape: f32[6,8,128], index: 2, kind: output, shape index: {}]  }
   0x1   :  { %8 = vsyncpa [#allocation6], 0 }
   0x2   :  { %9 = vsyncpa [#allocation4], 0  ;;  %s217_s9 = smov [#allocation2]   ;;  %s218_s11 = smov [#allocation5]  }
   0x3   :  { %s21_s10 = sshll.u32 %s217_s9, 4  ;;  %s36_s12 = sshll.u32 %s218_s11, 4  ;;  %s22_s10 = int_to_ptr.vmem [resolvable:$true] %s21_s10  ;;  %s37_s12 = int_to_ptr.vmem [resolvable:$true] %s36_s12 }
   0x4   :  { %s145_s15 = scalar_lea.hbm %s274_s0, 128 }
   0x5   :  { %p146_p0 = scmp.ne.s32.totalorder %s274_s0, %s145_s15  ;;  %p149_p1 = scmp.lt.u32.totalorder %s145_s15, %s274_s0 }
   0x7   :  { %p151_p2 = pnand %p149_p1, %p146_p0 }
   0x9   :  { %154 = shalt.err (!%p151_p2)
}
   0xa   :  { %s155_s20 = scalar_lea.vmem %s22_s10, 128  ;;  %p160_p4 = scmp.lt.s32.totalorder %s22_s10, %s22_s10 }
   0xb   :  { %p156_p3 = scmp.ne.s32.totalorder %s22_s10, %s155_s20  ;;  %p161_p5 = scmp.lt.s32.totalorder %s155_s20, %s155_s20 }
   0xd   :  { %p162_p6 = por %p161_p5, %p160_p4 }
   0xf   :  { %p163_p7 = pnand %p162_p6, %p156_p3 }
  0x11   :  { %166 = shalt.err (!%p163_p7)
}
  0x12   :  { %24 = dma.hbm_to_vmem [thread:$0]  %s274_s0, 128, %s22_s10, [#allocation3]  }
  0x13   :  { %s167_s25 = scalar_lea.hbm %s275_s1, 128 }
  0x14   :  { %p168_p8 = scmp.ne.s32.totalorder %s275_s1, %s167_s25  ;;  %p171_p9 = scmp.lt.u32.totalorder %s167_s25, %s275_s1 }
  0x16   :  { %p173_p10 = pnand %p171_p9, %p168_p8 }
  0x18   :  { %176 = shalt.err (!%p173_p10)
}
  0x19   :  { %s177_s30 = scalar_lea.vmem %s37_s12, 128  ;;  %p182_p12 = scmp.lt.s32.totalorder %s37_s12, %s37_s12 }
  0x1a   :  { %p178_p11 = scmp.ne.s32.totalorder %s37_s12, %s177_s30  ;;  %p183_p13 = scmp.lt.s32.totalorder %s177_s30, %s177_s30 }
  0x1c   :  { %p184_p0 = por %p183_p13, %p182_p12 }
  0x1e   :  { %p185_p1 = pnand %p184_p0, %p178_p11 }
  0x20   :  { %188 = shalt.err (!%p185_p1)
}
  0x21   :  { %39 = dma.hbm_to_vmem [thread:$0]  %s275_s1, 128, %s37_s12, [#allocation6]  }
  0x22   :  { %211 = dma.done.wait [#allocation3], 128  }
  0x23   :  { %212 = vsyncadd [#allocation3], 4294967168 }
  0x24   :  { %213 = dma.done.wait [#allocation6], 128  }
  0x25   :  { %214 = vsyncadd [#allocation6], 4294967168  ;;  %v67_v0 = vld [vmem:[#allocation5] sm:$0xff]  ;;  %v65_v1 = vld [vmem:[#allocation2] sm:$0xff]  ;;  %v219_v2 = vmov 0.0   ;;  %s220_s4 = smov [#allocation7]  }
  0x26   :  { %vm72_vm0 = vcmp.ne.f32.partialorder %v67_v0, -5.0  ;;  %s121_s5 = sshll.u32 %s220_s4, 4  ;;  %s122_s5 = int_to_ptr.vmem [resolvable:$true] %s121_s5 }
  0x27   :  { %v138_v3 = vsel %vm72_vm0, 1.0, %v219_v2  ;;  %v76_v4 = vsel %vm72_vm0, %v65_v1, 0.0  ;;  %v77_v5 = vsel %vm72_vm0, %v67_v0, 0.0  ;;  %s189_s1 = scalar_lea.vmem %s122_s5, 768  ;;  %p194_p3 = scmp.lt.s32.totalorder %s122_s5, %s122_s5 }
  0x28   :  { %v84_v6 = vmul.f32 %v76_v4, %v76_v4  ;;  %v87_v7 = vmul.f32 %v77_v5, %v77_v5  ;;  %v90_v8 = vmul.f32 %v77_v5, %v76_v4  ;;  %95 = vst [vmem:[#allocation7] sm:$0xff] %v138_v3  ;;  %99 = vst [vmem:[#allocation7 + $0x8] sm:$0xff] %v76_v4  ;;  %p190_p2 = scmp.ne.s32.totalorder %s122_s5, %s189_s1  ;;  %p195_p4 = scmp.lt.s32.totalorder %s189_s1, %s189_s1 }
  0x29   :  { %103 = vst [vmem:[#allocation7 + $0x10] sm:$0xff] %v77_v5 }
  0x2a   :  { %107 = vst [vmem:[#allocation7 + $0x18] sm:$0xff] %v84_v6  ;;  %111 = vst [vmem:[#allocation7 + $0x20] sm:$0xff] %v87_v7  ;;  %p196_p5 = por %p195_p4, %p194_p3 }
  0x2b   :  { %115 = vst [vmem:[#allocation7 + $0x28] sm:$0xff] %v90_v8 }
  0x2c   :  { %p197_p6 = pnand %p196_p5, %p190_p2 }
  0x2e   :  { %200 = shalt.err (!%p197_p6)
}
  0x2f   :  { %s201_s8 = scalar_lea.hbm %s276_s2, 768 }
  0x30   :  { %p202_p7 = scmp.ne.s32.totalorder %s276_s2, %s201_s8  ;;  %p205_p8 = scmp.lt.u32.totalorder %s201_s8, %s276_s2 }
  0x32   :  { %p207_p9 = pnand %p205_p8, %p202_p7 }
  0x34   :  { %210 = shalt.err (!%p207_p9)
}
  0x35   :  { %s221_s13 = smov 128   ;;  %s222_s14 = smov 8  }
  0x36   :  { %127 = dma.vmem_to_hbm [thread:$0]  %s122_s5, 768, %s276_s2, [#allocation4], %s221_s13, %s221_s13, %s222_s14  }
  0x37   :  { %215 = dma.done.wait [#allocation4], 768  }
  0x38   :  { %216 = vsyncadd [#allocation4], 4294966528 }
  0x39   :  { %131 = vsyncpa [#allocation3], 1 }
  0x3a   :  { %132 = vsyncpa [#allocation6], 1 }
  0x3b   :  { %133 = vsyncpa [#allocation4], 1 }

</bundles_post_ra>
